<compile_context>
chip_gen: v7x
topology: tpu7x:2x2x1
jax: 0.10.0
libtpu: 0.0.40
codegen_flags: <defaults>
</compile_context>

<pallas_src>
import functools

import jax
import jax.numpy as jnp
from jax.experimental import pallas as pl
from jax.experimental.pallas import tpu as pltpu


# --------------------------------------------------------------------------- #
# Hardware / sizing helpers
# --------------------------------------------------------------------------- #
@functools.lru_cache(maxsize=1)
def _vmem_capacity_bytes():
    """Physical VMEM per TensorCore (128 MiB on v5e/v6e, 64 MiB on v7x)."""
    try:
        cap = int(getattr(pltpu.get_tpu_info(), "vmem_capacity_bytes", 0))
        if cap > 0:
            return cap
    except Exception:
        pass
    return 64 << 20  # conservative fallback (v7x-sized)


def _round_up(x, m):
    return ((x + m - 1) // m) * m


def _padded_row_bytes(c, length, itemsize):
    """VMEM bytes of one (C, L) batch row after (sublane, lane) tile padding."""
    sublane = 8 * max(1, 4 // itemsize)  # 8 for f32, 16 for bf16, 32 for int8
    return _round_up(c, sublane) * _round_up(length, 128) * itemsize


def _pick_batch_tile(b, c, length, itemsize, budget_bytes):
    """Largest batch tile whose padded (tb, C, L) slab fits the per-buffer budget.

    Caps tb at ceil(B/2) so the grid always has >= 2 steps (feeds both v7x
    TensorCores through the "parallel" axis), and prefers a tb that divides B
    so the final grid step does not DMA a padded tile.
    """
    row = max(1, _padded_row_bytes(c, length, itemsize))
    tb = max(1, budget_bytes // row)
    if b >= 2:
        tb = min(tb, (b + 1) // 2)  # guarantee >= 2 grid steps
    tb = min(tb, b)
    # Prefer a divisor of B within ~20% below the budget-derived tb.
    lo = max(1, (tb * 4) // 5)
    for cand in range(tb, lo - 1, -1):
        if b % cand == 0:
            return cand
    return tb


# --------------------------------------------------------------------------- #
# Kernels
# --------------------------------------------------------------------------- #
def _se_gate(x, w1t, w2t):
    """Squeeze-excite gate: xm = mean_L(x) (f32), y = sigmoid(relu(xm@w1t)@w2t)."""
    # f32-accumulated mean on the VPU/XLU; fully hidden under the HBM DMA
    # stream.  TODO(synk): if the VALU slot ever becomes the binder, move this
    # onto the MXU via a 2D (tb*C, L) @ (L, 1) ones-contraction.
    xm = jnp.mean(x, axis=-1, dtype=jnp.float32)                       # (tb, C)
    h = jnp.dot(xm, w1t, preferred_element_type=jnp.float32)           # (tb, C_red)
    h = jnp.maximum(h, 0.0)                                            # ReLU
    y = jax.nn.sigmoid(jnp.dot(h, w2t, preferred_element_type=jnp.float32))
    return xm, y


def se_kernel_ft(x_ref, w1t_ref, w2t_ref, out_ref):
    """ft_flag=True path: out = x * y (broadcast over L), rescale in x.dtype."""
    x = x_ref[...]
    _, y = _se_gate(x, w1t_ref[...], w2t_ref[...])
    gate = y.astype(x.dtype)
    out_ref[...] = (x * gate[:, :, None]).astype(out_ref.dtype)


def se_kernel_noft(x_ref, w1t_ref, w2t_ref, out_ref, pooled_ref):
    """ft_flag=False path: also return avg_pool(x * (1 - y)) = (1 - y) * mean_L(x)."""
    x = x_ref[...]
    xm, y = _se_gate(x, w1t_ref[...], w2t_ref[...])
    gate = y.astype(x.dtype)
    out_ref[...] = (x * gate[:, :, None]).astype(out_ref.dtype)
    # Pooled block is (tb, 1, C): tb is a free leading dim (no sublane rounding).
    pooled_ref[...] = (((1.0 - y) * xm)[:, None, :]).astype(pooled_ref.dtype)


# --------------------------------------------------------------------------- #
# Wrapper
# --------------------------------------------------------------------------- #
@functools.partial(jax.jit, static_argnames=("ft_flag",))
def se_layer_2gm(x, w1, w2, ft_flag=True):
    b, c, length = x.shape
    c_red = w1.shape[0]
    assert w1.shape == (c_red, c) and w2.shape == (c, c_red)

    # Pre-transpose once in the wrapper so the kernel never transposes.
    w1t = jnp.transpose(w1)  # (C, C_red)
    w2t = jnp.transpose(w2)  # (C_red, C)

    itemsize = jnp.dtype(x.dtype).itemsize
    w_itemsize = jnp.dtype(w1.dtype).itemsize
    weight_bytes = (w1.size + w2.size) * w_itemsize

    # Generation-aware VMEM budget: ~85% of physical VMEM (≈108 MiB on
    # v5e/v6e, ≈54 MiB on v7x).  Per-buffer budget leaves room for 2 in + 2 out
    # double buffers, resident weights and compiler headroom.
    vmem_budget = int(_vmem_capacity_bytes() * 0.85)
    per_buffer = max(1 << 20, (vmem_budget - 2 * weight_bytes - (6 << 20)) // 4)

    tb = _pick_batch_tile(b, c, length, itemsize, per_buffer)
    grid = (pl.cdiv(b, tb),)

    # x / out: tiled over batch; last two dims use full extents (lane axis = L).
    x_spec = pl.BlockSpec((tb, c, length), lambda i: (i, 0, 0))
    out_spec = pl.BlockSpec((tb, c, length), lambda i: (i, 0, 0))
    # Weights: constant index_map -> resident in VMEM across all grid steps.
    w1_spec = pl.BlockSpec((c, c_red), lambda i: (0, 0))
    w2_spec = pl.BlockSpec((c_red, c), lambda i: (0, 0))
    # Pooled: (B, 1, C) array with (tb, 1, C) blocks -> tb unconstrained.
    pooled_spec = pl.BlockSpec((tb, 1, c), lambda i: (i, 0, 0))

    bytes_x = b * c * length * itemsize
    bytes_pooled = 0 if ft_flag else b * c * itemsize
    cost = pl.CostEstimate(
        flops=2 * b * c * length + 4 * b * c * c_red,
        transcendentals=b * c,
        bytes_accessed=2 * bytes_x + weight_bytes + bytes_pooled,
    )

    tile_bytes = tb * _padded_row_bytes(c, length, itemsize)
    pooled_tile_bytes = 0 if ft_flag else tb * 8 * _round_up(c, 128) * itemsize
    needed = 4 * tile_bytes + 2 * pooled_tile_bytes + 2 * weight_bytes + (4 << 20)
    vmem_limit = int(min(max(needed, 32 << 20), vmem_budget))
    cparams = pltpu.CompilerParams(
        dimension_semantics=("parallel",),
        vmem_limit_bytes=vmem_limit,
    )

    if ft_flag:
        return pl.pallas_call(
            se_kernel_ft,
            out_shape=jax.ShapeDtypeStruct((b, c, length), x.dtype),
            grid=grid,
            in_specs=[x_spec, w1_spec, w2_spec],
            out_specs=out_spec,
            compiler_params=cparams,
            cost_estimate=cost,
        )(x, w1t, w2t)
    else:
        out, pooled = pl.pallas_call(
            se_kernel_noft,
            out_shape=(
                jax.ShapeDtypeStruct((b, c, length), x.dtype),
                jax.ShapeDtypeStruct((b, 1, c), x.dtype),
            ),
            grid=grid,
            in_specs=[x_spec, w1_spec, w2_spec],
            out_specs=(out_spec, pooled_spec),
            compiler_params=cparams,
            cost_estimate=cost,
        )(x, w1t, w2t)
        return out, jnp.reshape(pooled, (b, c))


# --------------------------------------------------------------------------- #
# Pure-JAX reference (matches the PyTorch forward exactly)
# --------------------------------------------------------------------------- #
def _reference(x, w1, w2, ft_flag=True):
    xm = jnp.mean(x, axis=-1)
    y = jax.nn.sigmoid(jnp.maximum(xm @ w1.T, 0.0) @ w2.T)
    out = x * y[:, :, None]
    if ft_flag:
        return out
    pooled = jnp.mean(x * (1.0 - y)[:, :, None], axis=-1)
    return out, pooled


if __name__ == "__main__":
    # Small deterministic example: batch=2, channels=4, length=16, reduction=1.
    b, c, L = 2, 4, 16
    reduction = 1
    c_red = c // reduction

    key = jax.random.PRNGKey(0)
    kx, k1, k2 = jax.random.split(key, 3)
    x = jax.random.normal(kx, (b, c, L), dtype=jnp.float32)
    # Deterministic synthetic weights (stand-in for init_params in the module).
    w1 = 0.1 * jax.random.normal(k1, (c_red, c), dtype=jnp.float32)   # Linear(c, c_red)
    w2 = 0.1 * jax.random.normal(k2, (c, c_red), dtype=jnp.float32)   # Linear(c_red, c)

    # ft_flag=True path
    out = se_layer_2gm(x, w1, w2, ft_flag=True)
    out = jax.block_until_ready(out)
    ref = _reference(x, w1, w2, ft_flag=True)
    assert jnp.allclose(out, ref, atol=1e-5, rtol=1e-5)

    # ft_flag=False path
    out2, pooled2 = se_layer_2gm(x, w1, w2, ft_flag=False)
    out2 = jax.block_until_ready(out2)
    pooled2 = jax.block_until_ready(pooled2)
    ref2, ref_pooled2 = _reference(x, w1, w2, ft_flag=False)
    assert jnp.allclose(out2, ref2, atol=1e-5, rtol=1e-5)
    assert jnp.allclose(pooled2, ref_pooled2, atol=1e-5, rtol=1e-5)

    print("KERNEL_OK")
</pallas_src>

<mosaic_0001>
module attributes {stable_mosaic.version = 11 : i64} {
  func.func @se_kernel_ft(%arg0: i32, %arg1: memref<1x4x16xf32, #tpu.memory_space<vmem>>, %arg2: memref<4x4xf32, #tpu.memory_space<vmem>>, %arg3: memref<4x4xf32, #tpu.memory_space<vmem>>, %arg4: memref<1x4x16xf32, #tpu.memory_space<vmem>>) attributes {dimension_semantics = [#tpu.dimension_semantics<parallel>], iteration_bounds = array<i64: 2>, scalar_prefetch = 0 : i64, scratch_operands = 0 : i64, tpu.core_type = #tpu.core_type<tc>, window_params = [{transform_indices = @transform_0, window_bounds = array<i64: 1, 4, 16>}, {pipeline_mode = #tpu.pipeline_mode<synchronous>, transform_indices = @transform_1, window_bounds = array<i64: 4, 4>}, {pipeline_mode = #tpu.pipeline_mode<synchronous>, transform_indices = @transform_2, window_bounds = array<i64: 4, 4>}, {transform_indices = @transform_3, window_bounds = array<i64: 1, 4, 16>}]} {
    %c0 = arith.constant 0 : index
    %c0_0 = arith.constant 0 : index
    %c0_1 = arith.constant 0 : index
    %0 = vector.load %arg1[%c0, %c0_0, %c0_1] : memref<1x4x16xf32, #tpu.memory_space<vmem>>, vector<1x4x16xf32>
    %c0_2 = arith.constant 0 : index
    %c0_3 = arith.constant 0 : index
    %1 = vector.load %arg2[%c0_2, %c0_3] : memref<4x4xf32, #tpu.memory_space<vmem>>, vector<4x4xf32>
    %c0_4 = arith.constant 0 : index
    %c0_5 = arith.constant 0 : index
    %2 = vector.load %arg3[%c0_4, %c0_5] : memref<4x4xf32, #tpu.memory_space<vmem>>, vector<4x4xf32>
    %cst = arith.constant dense<0.000000e+00> : vector<1x4xf32>
    %3 = vector.multi_reduction <add>, %0, %cst [2] : vector<1x4x16xf32> to vector<1x4xf32>
    %cst_6 = arith.constant 1.600000e+01 : f32
    %4 = vector.broadcast %cst_6 : f32 to vector<1x4xf32>
    %5 = arith.divf %3, %4 : vector<1x4xf32>
    %cst_7 = arith.constant dense<0.000000e+00> : vector<1x4xf32>
    %6 = tpu.matmul %5, %1, %cst_7 {dimension_numbers = #tpu.dot_dimension_numbers<[1], [0], [0], [1], [0, 0, 1, 1], [], []>} : vector<1x4xf32>, vector<4x4xf32>, vector<1x4xf32> -> vector<1x4xf32>
    %cst_8 = arith.constant 0.000000e+00 : f32
    %7 = vector.broadcast %cst_8 : f32 to vector<1x4xf32>
    %8 = arith.maximumf %6, %7 : vector<1x4xf32>
    %cst_9 = arith.constant dense<0.000000e+00> : vector<1x4xf32>
    %9 = tpu.matmul %8, %2, %cst_9 {dimension_numbers = #tpu.dot_dimension_numbers<[1], [0], [0], [1], [0, 0, 1, 1], [], []>} : vector<1x4xf32>, vector<4x4xf32>, vector<1x4xf32> -> vector<1x4xf32>
    %10 = arith.negf %9 : vector<1x4xf32>
    %11 = math.exp %10 : vector<1x4xf32>
    %cst_10 = arith.constant 1.000000e+00 : f32
    %12 = vector.broadcast %cst_10 : f32 to vector<1x4xf32>
    %13 = arith.addf %12, %11 : vector<1x4xf32>
    %14 = arith.divf %12, %13 : vector<1x4xf32>
    %15 = vector.shape_cast %14 : vector<1x4xf32> to vector<1x4x1xf32>
    %16 = vector.broadcast %15 : vector<1x4x1xf32> to vector<1x4x16xf32>
    %17 = arith.mulf %0, %16 : vector<1x4x16xf32>
    %c0_11 = arith.constant 0 : index
    %c0_12 = arith.constant 0 : index
    %c0_13 = arith.constant 0 : index
    %18 = vector.load %arg4[%c0_11, %c0_12, %c0_13] : memref<1x4x16xf32, #tpu.memory_space<vmem>>, vector<1x4x16xf32>
    tpu.vector_store %arg4[%c0_11, %c0_12, %c0_13], %17 {strides = array<i32>} : memref<1x4x16xf32, #tpu.memory_space<vmem>>, vector<1x4x16xf32>,
    return
  }
  func.func @transform_0(%arg0: i32) -> (i32, i32, i32) {
    %c0_i32 = arith.constant 0 : i32
    %c0_i32_0 = arith.constant 0 : i32
    %c0_i32_1 = arith.constant 0 : i32
    return %arg0, %c0_i32, %c0_i32_0 : i32, i32, i32
  }
  func.func @transform_1(%arg0: i32) -> (i32, i32) {
    %c0_i32 = arith.constant 0 : i32
    %c0_i32_0 = arith.constant 0 : i32
    %c0_i32_1 = arith.constant 0 : i32
    return %c0_i32, %c0_i32_0 : i32, i32
  }
  func.func @transform_2(%arg0: i32) -> (i32, i32) {
    %c0_i32 = arith.constant 0 : i32
    %c0_i32_0 = arith.constant 0 : i32
    %c0_i32_1 = arith.constant 0 : i32
    return %c0_i32, %c0_i32_0 : i32, i32
  }
  func.func @transform_3(%arg0: i32) -> (i32, i32, i32) {
    %c0_i32 = arith.constant 0 : i32
    %c0_i32_0 = arith.constant 0 : i32
    %c0_i32_1 = arith.constant 0 : i32
    return %arg0, %c0_i32, %c0_i32_0 : i32, i32, i32
  }
}

</mosaic_0001>

<bundles_post_ra>
// kernel: se_layer_2gm.1
= control target key start
LH: loop header
LB: loop body
LE: loop exit
PB: predicated region body
PF: predicated region fallthrough
CT: control target
= control target key end

     0   :  { %8 = vsyncpa [#allocation3], 0  ;;  %s695_s0 = inlined_call_operand.vmem [shape: f32[2,4,16], index: 0, kind: input, shape index: {}]   ;;  %s696_s1 = inlined_call_operand.vmem [shape: f32[4,4], index: 1, kind: input, shape index: {}]   ;;  %s697_s2 = inlined_call_operand.vmem [shape: f32[4,4], index: 2, kind: input, shape index: {}]   ;;  %s698_s3 = inlined_call_operand.hbm [shape: f32[2,4,16], index: 3, kind: output, shape index: {}]  }
   0x1   :  { %10 = vsyncpa [#allocation3 + $0x1], 0  ;;  %s585_s12 = smov 0   ;;  %s587_s13 = smov 0  }
   0x2   :  { %s589_s14 = smov 0   ;;  %s591_s15 = smov 0  }
   0x3 LB: > { %s606_s16 = sadd.s32 4294967295, %s560_s15   ;;  %s424_s17 = sadd.s32 4294967294, %s560_s15   ;;  %s560_s15 = sphi %s591_s15, %s704_s15   ;;  %s556_s14 = sphi %s589_s14, %s703_s14   ;;  %s552_s13 = sphi %s587_s13, %s702_s13   ;;  %s548_s12 = sphi %s585_s12, %s701_s12  }
   0x4   : > { %s610_s18 = sadd.s32 1, %s560_s15   ;;  %s91_s19 = sadd.s32 1, %s556_s14 }
   0x5   : > { %s88_s20 = ssub.s32 %s560_s15, %s610_s18  ;;  %p101_p0 = scmp.ne.s32.totalorder %s556_s14, %s552_s13 }
   0x6   : > { %p89_p1 = scmp.eq.s32.totalorder %s88_s20, 0  ;;  %p102_p2 = scmp.eq.s32.totalorder %s606_s16, 1 }
   0x7   : > { %p107_p3 = scmp.ne.s32.totalorder %s552_s13, %s548_s12  ;;  %p108_p4 = scmp.eq.s32.totalorder %s424_s17, 1 }
   0x8   : > { %s621_s21 = scalar_select %p89_p1, %s556_s14, %s91_s19  }
   0x9   : > { %p623_p5 = por %p102_p2, %p101_p0  ;;  %p627_p6 = por %p108_p4, %p107_p3 }
   0xa   : > { %p427_p7 = scmp.ge.s32.totalorder %s560_s15, 1  ;;  %p139_p8 = scmp.lt.s32.totalorder %s560_s15, 3 }
   0xc   : > { %p140_p9 = pnand %p427_p7, %p139_p8 }
   0xd   : > { %p162_p10 = scmp.lt.s32.totalorder (!%p140_p9), %s606_s16, 1  ;;  %vm169_vm0 = vcmask (!%p140_p9), 125952   ;;  %v562_v2 = vmov (!%p140_p9), 0.0   ;;  %v167_v3 = vld [vmem:[%s696_s1] sm:$0xf] (!%p140_p9)  ;;  %vm185_vm1 = vcmask (!%p140_p9), 1043456   ;;  %v176_v4 = vlaneseq (!%p140_p9) }
   0xe   : > { %143 = sbr.rel (%p140_p9) target bundleno = 758 (0x2f6), region = 32  ;;  %443 = vmatprep.subr.mxu0 (!%p140_p9), %v562_v2  ;;  %448 = vmatprep.subr.mxu1 (!%p140_p9), %v562_v2  ;;  %vm563_vm2 = vmmov (!%p140_p9), 0   ;;  %vm182_vm3 = vcmask (!%p140_p9), 31744   ;;  %v168_v11 = vld [vmem:[%s697_s2] sm:$0xf] (!%p140_p9)  ;;  %s159_s6 = sand.u32 (!%p140_p9), 1, %s552_s13  }
   0xf   : > { %444 = vmatpush3.msk.msra.mxu0 (!%p140_p9), %vm185_vm1, %v167_v3  ;;  %445 = vmatprep.mubr.msk.f32.mxu0 (!%p140_p9), %vm563_vm2, %v562_v2  ;;  %v177_v5 = vand.u32 (!%p140_p9), 127, %v176_v4  ;;  %v179_v6 = vshrl.u32 (!%p140_p9), %v176_v4, 7  ;;  %s428_s7 = sshll.u32 (!%p140_p9), %s159_s6, 2  ;;  %s436_s8 = sshll.u32 (!%p140_p9), %s606_s16, 6 }
  0x10   : > { %450 = vmatprep.mubr.msk.f32.mxu1 (!%p140_p9), %vm563_vm2, %v562_v2  ;;  %449 = vmatpush3.msk.msra.mxu1 (!%p140_p9), %vm185_vm1, %v168_v11  ;;  %s161_s9 = scalar_lea.vmem (!%p140_p9), [#allocation2], %s428_s7  ;;  %s652_s19 = scalar_lea.hbm (!%p140_p9), %s698_s3, %s436_s8 }
  0x11   : > { %v180_v7 = vsub.s32 (!%p140_p9), %v177_v5, %v179_v6  ;;  %v344_v20 = vsub.s32 (!%p140_p9), 0, %v179_v6  ;;  %s365_s10 = sshll.u32 (!%p140_p9), %s161_s9, 4  ;;  %s352_s20 = scalar_lea.sflag (!%p140_p9), [#allocation3], %s159_s6  ;;  %s654_s10 = int_to_ptr.vmem [resolvable:$true] %s365_s10 }
  0x15   : > { %s163_s24 = scalar_select %p162_p10, %s606_s16, 1 }
  0x16   : > { %s564_s16 = smov [#allocation2]  }
  0x17   : > { %s429_s25 = sshll.u32 %s163_s24, 2  ;;  %s498_s24 = scalar_lea.vmem %s654_s10, 64 }
  0x18   : > { %s165_s28 = scalar_lea.vmem %s695_s0, %s429_s25  ;;  %p499_p11 = scmp.ne.s32.totalorder %s654_s10, %s498_s24 }
  0x19   : > { %v166_v0 = vld [vmem:[%s165_s28] sm:$0xf]  ;;  %s502_s25 = sshll.u32 %s564_s16, 4  ;;  %s503_s25 = int_to_ptr.vmem [resolvable:$false] %s502_s25 }
  0x1a   : > { %v170_v1 = vsel %vm169_vm0, %v166_v0, 0.0  ;;  %p500_p12 = pnand %p499_p11, %p623_p5  ;;  %s504_s26 = scalar_lea.vmem %s503_s25, 128 }
  0x1b   : > { %171 = vadd.xlane.f32.xlu0 %v170_v1  ;;  %p505_p0 = scmp.lt.s32.totalorder %s654_s10, %s503_s25  ;;  %p506_p1 = scmp.lt.s32.totalorder %s504_s26, %s498_s24 }
  0x1c   : > { %p501_p13 = pneg %p500_p12 }
  0x1d   : > { %p507_p2 = por %p506_p1, %p505_p0 }
  0x1f   : > { %p508_p3 = pnand %p507_p2, %p501_p13 }
  0xa8   : > { %v172_v8 = vpop.xlane.xlu0 %171 }
  0xa9   : > { %v174_v9 = vmul.f32 0.0625, %v172_v8 }
  0xab   : > { %v181_v10 = vrot.slane %v174_v9, %v180_v7 }
  0xad   : > { %446 = vmatmul.mubr.msk.f32.vlgmr.msra.gmra.mrb[0].mxu0 %vm182_vm3, %v181_v10 }
 0x180   : > { %v255_v12 = vpop.f32.mrb[0].mxu0 }
 0x181   : > { %v259_v13 = vmax.f32 %v255_v12, 0.0  ;;  %v447_v14 = vpop.f32.mrb[1].mxu0 }
 0x183   : > { %451 = vmatmul.mubr.msk.f32.vlgmr.msra.gmra.mrb[0].mxu1 %vm182_vm3, %v259_v13 }
 0x256   : > { %v332_v15 = vpop.f32.mrb[0].mxu1 }
 0x257   : > { %v434_v16 = vmul.f32 -1.442695, %v332_v15  ;;  %v452_v17 = vpop.f32.mrb[1].mxu1 }
 0x259   : > { %494 = vpow2.f32 %v434_v16 }
 0x263   : > { %v495_v18 = vpop.eup %494 }
 0x264   : > { %v339_v19 = vadd.f32 1.0, %v495_v18 }
 0x266   : > { %496 = vrcp.f32 %v339_v19 }
 0x270   : > { %v497_v21 = vpop.eup %496 }
 0x271   : > { %v345_v22 = vrot.slane %v497_v21, %v344_v20 }
 0x273   : > { %347 = vbcast.lane.b32.xlu0 %v345_v22, 256 }
 0x2e5   : > { %v348_v23 = vpop.permute.xlu0 %347 }
 0x2e6   : > { %v349_v24 = vmul.f32 %v348_v23, %v166_v0 }
 0x2e8   : > { %350 = vst.msk [vmem:[%s161_s9] sm:$0xf] %vm169_vm0, %v349_v24 }
 0x2e9   : > { %511 = shalt.err (!%p508_p3)
}
 0x2ea   : > { %s512_s27 = scalar_lea.hbm %s652_s19, 64  ;;  %s516_s30 = scalar_lea.hbm %s698_s3, 128 }
 0x2eb   : > { %p513_p4 = scmp.ne.s32.totalorder %s652_s19, %s512_s27  ;;  %p517_p9 = scmp.lt.u32.totalorder %s652_s19, %s698_s3 }
 0x2ec   : > { %p518_p10 = scmp.lt.u32.totalorder %s516_s30, %s512_s27  ;;  %p520_p12 = scmp.lt.u32.totalorder %s512_s27, %s652_s19 }
 0x2ed   : > { %p514_p7 = pnand %p513_p4, %p623_p5 }
 0x2ee   : > { %p519_p11 = por %p518_p10, %p517_p9 }
 0x2ef   : > { %p515_p8 = pneg %p514_p7 }
 0x2f0   : > { %p521_p13 = por %p520_p12, %p519_p11 }
 0x2f2   : > { %p522_p0 = pnand %p521_p13, %p515_p8 }
 0x2f4   : > { %525 = shalt.err (!%p522_p0)
}
 0x2f5   : > { %453 = dma.vmem_to_hbm [thread:$0]  (%p623_p5), %s654_s10, 64, %s652_s19, %s352_s20  }
 0x2f6 PF: > { %p459_p1 = scmp.ge.s32.totalorder %s560_s15, 2  ;;  %s377_s6 = sand.u32 1, %s548_s12  }
 0x2f7   : > { %s378_s7 = scalar_lea.sflag [#allocation3], %s377_s6 }
 0x2f8   : > { %p456_p2 = pnand %p459_p1, %p627_p6 }
 0x2fa   : > { %543 = dma.done.wait (!%p456_p2), %s378_s7, 64  }
 0x2fb   : > { %545 = vsyncadd (!%p456_p2), %s378_s7, 4294967232  ;;  %p13_p3 = scmp.ge.s32.totalorder %s610_s18, 4   ;;  %s701_s12 = smov %s552_s13 }
 0x2fc   : > { %s702_s13 = smov %s556_s14  ;;  %s703_s14 = smov %s621_s21 }
 0x2fd   : > { %s704_s15 = smov %s610_s18  ;;  %15 = sbr.rel (!%p13_p3) target bundleno = 3 (0x3), region = 67 }
 0x304   :  { %383 = vsyncpa [#allocation3], 1 }
 0x305   :  { %385 = vsyncpa [#allocation3 + $0x1], 1 }

</bundles_post_ra>
